<compile_context>
chip_gen: v7x
topology: tpu7x:2x2x1
jax: 0.10.0
libtpu: 0.0.40
codegen_flags: <defaults>
</compile_context>

<pallas_src>
import jax
import jax.numpy as jnp
from jax import lax
from jax.experimental import pallas as pl
from jax.experimental.pallas import tpu as pltpu

K_NEIGHBORS = 3


def _transition_up_kernel(x1_ref, p1a_ref, p2a_ref, h2_ref, w1_ref, c1_ref, out_ref):
    TQ = x1_ref.shape[1]            # query-tile size
    N = h2_ref.shape[1]             # number of coarse (source) points

    # ---- linear1(x1): Linear (BN pre-folded on host), bf16 operands, f32 accum, ReLU ----
    h1 = jnp.maximum(
        jnp.dot(x1_ref[0], w1_ref[...], preferred_element_type=jnp.float32) + c1_ref[...],
        0.0)                                                          # (TQ, Cout) f32

    # ---- squared pairwise distances as a single MXU matmul on augmented coordinates ----
    # p1_aug = [-2*p1, ||p1||^2, 1] (TQ, 5); p2_aug^T = [p2^T; 1; ||p2||^2] (5, N)
    # => dist[q, n] = ||p1_q||^2 + ||p2_n||^2 - 2 <p1_q, p2_n>; clamp fp cancellation.
    dist = jnp.maximum(
        jnp.dot(p1a_ref[0], p2a_ref[0], preferred_element_type=jnp.float32), 0.0)  # (TQ, N)

    # ---- k-NN (k=3) with index-packed single-min per neighbor ----
    # For non-negative f32 the int32 bit pattern is order-preserving; replace the low
    # ceil(log2(N)) mantissa bits with the column index so ONE cross-lane min per neighbor
    # yields both dmin and argmin.
    col_bits = max(1, (N - 1).bit_length())
    low_mask = (1 << col_bits) - 1
    high_mask = ~low_mask                                   # python int, two's complement
    col = lax.broadcasted_iota(jnp.int32, (TQ, N), 1)
    keys = (pltpu.bitcast(dist, jnp.int32) & high_mask) | col

    int_max = jnp.iinfo(jnp.int32).max
    w_acc = jnp.zeros((TQ, N), jnp.float32)     # UNNORMALIZED inverse-distance weights
    inv_sum = jnp.zeros((TQ, 1), jnp.float32)
    for kk in range(K_NEIGHBORS):
        kmin = jnp.min(keys, axis=1, keepdims=True)              # XLU reduce: (dmin, argmin)
        idx = kmin & low_mask                                    # argmin column, (TQ, 1)
        dmin = pltpu.bitcast(kmin & high_mask, jnp.float32)      # sq. dist (low bits trunc.)
        invd = pl.reciprocal(dmin + 1e-8, approx=True)           # (TQ, 1), EUP slot
        inv_sum = inv_sum + invd
        sel = col == idx                                         # (TQ, N) one-hot
        w_acc = w_acc + jnp.where(sel, invd, 0.0)
        if kk < K_NEIGHBORS - 1:
            keys = jnp.where(sel, int_max, keys)                 # exclude for next round

    # ---- interpolation matmul on the MXU (bf16 operands, f32 accum); the 1/sum(invd)
    #      normalization is applied at (TQ, Cout) granularity, never on the (TQ, N) slab ----
    interp = jnp.dot(w_acc.astype(jnp.bfloat16), h2_ref[0],
                     preferred_element_type=jnp.float32)          # (TQ, Cout)
    r = pl.reciprocal(inv_sum, approx=True)                       # (TQ, 1), EUP slot

    out_ref[0] = (h1 + interp * r).astype(out_ref.dtype)


def _chip_defaults():
    """Per-generation (tq_target, vmem_limit): v7x has 64 MiB VMEM/TC, v5e/v6e have 128 MiB."""
    try:
        vmem_cap = int(pltpu.get_tpu_info().vmem_capacity_bytes)
    except Exception:
        vmem_cap = 128 * 1024 * 1024
    if vmem_cap <= 96 * 1024 * 1024:            # v7x
        return 128, 56 * 1024 * 1024
    return 512, 100 * 1024 * 1024               # v5e / v6e


def _pick_tq(Q, target):
    """Largest multiple-of-8 divisor of Q that is <= target (keeps the (8,128) sublane tiling
    of the (1, tq, C) blocks legal and unmasked)."""
    target = max(8, min(target, Q))
    for d in range((target // 8) * 8, 0, -8):
        if Q % d == 0:
            return d
    # No multiple-of-8 divisor <= target: the full extent is always layout-legal.
    # TODO(synk): pad Q to a multiple of 8 and mask the tail for large ragged Q.
    return Q


def transition_up(x1, p1, x2, p2, params, *, tq=None):
    """params = (w1, b1, s1, t1, w2, b2, s2, t2); weights are (in, out), vectors are (1, C).
    s*, t* are the eval-mode BatchNorm scale/shift; they are folded into the Linears here."""
    B, Q, Cout = x1.shape
    _, N, Cin = x2.shape
    w1, b1, s1, t1, w2, b2, s2, t2 = params

    # Fold BN (eval) into the Linear: relu((x@W + b)*s + t) == relu(x@W' + c)
    w1f = (w1 * s1).astype(jnp.bfloat16)        # bf16 operand -> full-rate MXU in-kernel
    c1 = (b1 * s1 + t1).astype(jnp.float32)
    w2f = (w2 * s2).astype(jnp.float32)
    c2 = (b2 * s2 + t2).astype(jnp.float32)

    # linear2 depends only on the batch index -> hoisted out of the per-tile grid body and
    # precomputed once (plain XLA matmul per the perf review), fed in as resident bf16 h2.
    h2 = jnp.maximum(x2.astype(jnp.float32) @ w2f + c2, 0.0).astype(jnp.bfloat16)  # (B, N, Cout)

    # Augmented coordinates so the in-kernel distance is a single matmul (no (TQ, N)
    # broadcast-add VPU passes): dist = p1_aug @ p2_aug^T = qq + pp - 2*<p1, p2>.
    p1f = p1.astype(jnp.float32)
    p2f = p2.astype(jnp.float32)
    qq = jnp.sum(p1f * p1f, axis=-1, keepdims=True)                         # (B, Q, 1)
    pp = jnp.sum(p2f * p2f, axis=-1, keepdims=True)                         # (B, N, 1)
    p1_aug = jnp.concatenate([-2.0 * p1f, qq, jnp.ones_like(qq)], axis=-1)  # (B, Q, 5)
    p2t_aug = jnp.swapaxes(
        jnp.concatenate([p2f, jnp.ones_like(pp), pp], axis=-1), 1, 2)       # (B, 5, N)

    x1b = x1.astype(jnp.bfloat16)   # halves HBM read traffic of the q-tiled feature input

    # ---- tile-size / VMEM budget (per-generation) ----
    tq_target, vmem_limit = _chip_defaults()
    if tq is None:
        # keep ~4 live (tq, N) f32 kNN slabs within half the VMEM budget
        tq_target = min(tq_target, max(8, (vmem_limit // 2) // (16 * max(N, 1))))
    else:
        tq_target = tq
    tq = _pick_tq(Q, tq_target)

    # NOTE: for real models Cout >= 128 so the (1, tq, Cout) output block is lane-dense;
    # output stays f32 here (switch out_shape to bf16 if the consumer tolerates it).
    q_block = lambda last: pl.BlockSpec((1, tq, last), lambda b, q: (b, q, 0))
    per_batch = lambda shp: pl.BlockSpec(shp, lambda b, q: (b, 0, 0))
    resident = lambda arr: pl.BlockSpec(arr.shape, lambda b, q: (0,) * arr.ndim)

    return pl.pallas_call(
        _transition_up_kernel,
        out_shape=jax.ShapeDtypeStruct((B, Q, Cout), jnp.float32),
        grid=(B, Q // tq),
        in_specs=[
            q_block(Cout),                  # x1     (1, tq, Cout) bf16
            q_block(5),                     # p1_aug (1, tq, 5)    f32
            per_batch((1, 5, N)),           # p2_aug^T, resident across the q axis
            per_batch((1, N, Cout)),        # h2 (bf16), resident across the q axis
            resident(w1f), resident(c1),
        ],
        out_specs=q_block(Cout),
        compiler_params=pltpu.CompilerParams(
            dimension_semantics=("parallel", "parallel"),
            vmem_limit_bytes=vmem_limit,
        ),
    )(x1b, p1_aug, p2t_aug, h2, w1f, c1)


def _fold_bn(gamma, beta, mean, var, eps=1e-5):
    scale = gamma / jnp.sqrt(var + eps)
    shift = beta - mean * scale
    return scale[None, :], shift[None, :]


def _reference(x1, p1, x2, p2, params):
    """Pure-JAX (f32) reference of the same semantics, for correctness check."""
    w1, b1, s1, t1, w2, b2, s2, t2 = params
    h1 = jnp.maximum((x1 @ w1 + b1) * s1 + t1, 0.0)
    h2 = jnp.maximum((x2 @ w2 + b2) * s2 + t2, 0.0)
    d = jnp.sum((p1[:, :, None, :] - p2[:, None, :, :]) ** 2, axis=-1)  # (B, Q, N) squared
    neg_d, ind = lax.top_k(-d, K_NEIGHBORS)
    dist = -neg_d
    inv = 1.0 / (dist + 1e-8)
    w = inv / jnp.sum(inv, axis=-1, keepdims=True)

    def gather_one(feat_b, ind_b, w_b):
        g = feat_b[ind_b]                                               # (Q, k, C)
        return jnp.sum(g * w_b[..., None], axis=1)

    interp = jax.vmap(gather_one)(h2, ind, w)
    return h1 + interp


if __name__ == "__main__":
    B, N = 2, 8
    in_planes, out_planes = 8, 4        # C = 8, C/2 = 4
    Q = 4 * N                            # 4N = 32

    key = jax.random.PRNGKey(0)
    ks = jax.random.split(key, 16)

    x1 = jax.random.normal(ks[0], (B, Q, out_planes), jnp.float32)
    p1 = jax.random.uniform(ks[1], (B, Q, 3), jnp.float32)
    x2 = jax.random.normal(ks[2], (B, N, in_planes), jnp.float32)
    p2 = jax.random.uniform(ks[3], (B, N, 3), jnp.float32)

    # linear1: Linear(out_planes, out_planes) + BN(out_planes)
    w1 = jax.random.normal(ks[4], (out_planes, out_planes), jnp.float32) / jnp.sqrt(out_planes)
    b1 = (jax.random.normal(ks[5], (out_planes,), jnp.float32) * 0.1)[None, :]
    s1, t1 = _fold_bn(
        1.0 + 0.1 * jax.random.normal(ks[6], (out_planes,), jnp.float32),
        0.1 * jax.random.normal(ks[7], (out_planes,), jnp.float32),
        0.1 * jax.random.normal(ks[8], (out_planes,), jnp.float32),
        1.0 + 0.1 * jax.random.uniform(ks[9], (out_planes,), jnp.float32),
    )
    # linear2: Linear(in_planes, out_planes) + BN(out_planes)
    w2 = jax.random.normal(ks[10], (in_planes, out_planes), jnp.float32) / jnp.sqrt(in_planes)
    b2 = (jax.random.normal(ks[11], (out_planes,), jnp.float32) * 0.1)[None, :]
    s2, t2 = _fold_bn(
        1.0 + 0.1 * jax.random.normal(ks[12], (out_planes,), jnp.float32),
        0.1 * jax.random.normal(ks[13], (out_planes,), jnp.float32),
        0.1 * jax.random.normal(ks[14], (out_planes,), jnp.float32),
        1.0 + 0.1 * jax.random.uniform(ks[15], (out_planes,), jnp.float32),
    )
    params = (w1, b1, s1, t1, w2, b2, s2, t2)

    # tq=16 exercises the (B, Q//TQ) tiling (2 query tiles per batch element).
    out = transition_up(x1, p1, x2, p2, params, tq=16)
    out = jax.block_until_ready(out)

    ref = _reference(x1, p1, x2, p2, params)
    # Tolerance accounts for the bf16 MXU paths (linear1 + interpolation) and the EUP
    # approximate reciprocals in the inverse-distance weighting.
    if not jnp.allclose(out, ref, rtol=3e-2, atol=1e-2):
        raise AssertionError("Pallas kernel does not match reference")
    print("KERNEL_OK")
</pallas_src>

<mosaic_0001>
module attributes {stable_mosaic.version = 11 : i64} {
  func.func @_transition_up_kernel(%arg0: i32, %arg1: i32, %arg2: memref<1x16x4xbf16, #tpu.memory_space<vmem>>, %arg3: memref<1x16x5xf32, #tpu.memory_space<vmem>>, %arg4: memref<1x5x8xf32, #tpu.memory_space<vmem>>, %arg5: memref<1x8x4xbf16, #tpu.memory_space<vmem>>, %arg6: memref<4x4xbf16, #tpu.memory_space<vmem>>, %arg7: memref<1x4xf32, #tpu.memory_space<vmem>>, %arg8: memref<1x16x4xf32, #tpu.memory_space<vmem>>) attributes {dimension_semantics = [#tpu.dimension_semantics<parallel>, #tpu.dimension_semantics<parallel>], iteration_bounds = array<i64: 2, 2>, scalar_prefetch = 0 : i64, scratch_operands = 0 : i64, tpu.core_type = #tpu.core_type<tc>, window_params = [{transform_indices = @transform_0, window_bounds = array<i64: 1, 16, 4>}, {transform_indices = @transform_1, window_bounds = array<i64: 1, 16, 5>}, {transform_indices = @transform_2, window_bounds = array<i64: 1, 5, 8>}, {transform_indices = @transform_3, window_bounds = array<i64: 1, 8, 4>}, {pipeline_mode = #tpu.pipeline_mode<synchronous>, transform_indices = @transform_4, window_bounds = array<i64: 4, 4>}, {pipeline_mode = #tpu.pipeline_mode<synchronous>, transform_indices = @transform_5, window_bounds = array<i64: 1, 4>}, {transform_indices = @transform_6, window_bounds = array<i64: 1, 16, 4>}]} {
    %c0 = arith.constant 0 : index
    %c0_0 = arith.constant 0 : index
    %c0_1 = arith.constant 0 : index
    %0 = vector.load %arg2[%c0, %c0_0, %c0_1] : memref<1x16x4xbf16, #tpu.memory_space<vmem>>, vector<1x16x4xbf16>
    %1 = vector.shape_cast %0 : vector<1x16x4xbf16> to vector<16x4xbf16>
    %c0_2 = arith.constant 0 : index
    %c0_3 = arith.constant 0 : index
    %2 = vector.load %arg6[%c0_2, %c0_3] : memref<4x4xbf16, #tpu.memory_space<vmem>>, vector<4x4xbf16>
    %cst = arith.constant dense<0.000000e+00> : vector<16x4xf32>
    %3 = tpu.matmul %1, %2, %cst {dimension_numbers = #tpu.dot_dimension_numbers<[1], [0], [0], [1], [0, 0, 1, 1], [], []>} : vector<16x4xbf16>, vector<4x4xbf16>, vector<16x4xf32> -> vector<16x4xf32>
    %c0_4 = arith.constant 0 : index
    %c0_5 = arith.constant 0 : index
    %4 = vector.load %arg7[%c0_4, %c0_5] : memref<1x4xf32, #tpu.memory_space<vmem>>, vector<1x4xf32>
    %5 = vector.broadcast %4 : vector<1x4xf32> to vector<16x4xf32>
    %6 = arith.addf %3, %5 : vector<16x4xf32>
    %cst_6 = arith.constant 0.000000e+00 : f32
    %7 = vector.broadcast %cst_6 : f32 to vector<16x4xf32>
    %8 = arith.maximumf %6, %7 : vector<16x4xf32>
    %c0_7 = arith.constant 0 : index
    %c0_8 = arith.constant 0 : index
    %c0_9 = arith.constant 0 : index
    %9 = vector.load %arg3[%c0_7, %c0_8, %c0_9] : memref<1x16x5xf32, #tpu.memory_space<vmem>>, vector<1x16x5xf32>
    %10 = vector.shape_cast %9 : vector<1x16x5xf32> to vector<16x5xf32>
    %c0_10 = arith.constant 0 : index
    %c0_11 = arith.constant 0 : index
    %c0_12 = arith.constant 0 : index
    %11 = vector.load %arg4[%c0_10, %c0_11, %c0_12] : memref<1x5x8xf32, #tpu.memory_space<vmem>>, vector<1x5x8xf32>
    %12 = vector.shape_cast %11 : vector<1x5x8xf32> to vector<5x8xf32>
    %cst_13 = arith.constant dense<0.000000e+00> : vector<16x8xf32>
    %13 = tpu.matmul %10, %12, %cst_13 {dimension_numbers = #tpu.dot_dimension_numbers<[1], [0], [0], [1], [0, 0, 1, 1], [], []>} : vector<16x5xf32>, vector<5x8xf32>, vector<16x8xf32> -> vector<16x8xf32>
    %cst_14 = arith.constant 0.000000e+00 : f32
    %14 = vector.broadcast %cst_14 : f32 to vector<16x8xf32>
    %15 = arith.maximumf %13, %14 : vector<16x8xf32>
    %16 = tpu.iota {dimensions = array<i32: 1>} : vector<16x8xi32>
    %17 = tpu.bitcast %15 : vector<16x8xf32> -> vector<16x8xi32>
    %c-8_i32 = arith.constant -8 : i32
    %18 = vector.broadcast %c-8_i32 : i32 to vector<16x8xi32>
    %19 = arith.andi %17, %18 : vector<16x8xi32>
    %20 = arith.ori %19, %16 : vector<16x8xi32>
    %cst_15 = arith.constant 0.000000e+00 : f32
    %21 = vector.broadcast %cst_15 : f32 to vector<16x8xf32>
    %cst_16 = arith.constant 0.000000e+00 : f32
    %22 = vector.broadcast %cst_16 : f32 to vector<16x1xf32>
    %cst_17 = arith.constant dense<2147483647> : vector<16xi32>
    %23 = vector.multi_reduction <minsi>, %20, %cst_17 [1] : vector<16x8xi32> to vector<16xi32>
    %24 = vector.shape_cast %23 : vector<16xi32> to vector<16x1xi32>
    %c7_i32 = arith.constant 7 : i32
    %25 = vector.broadcast %c7_i32 : i32 to vector<16x1xi32>
    %26 = arith.andi %24, %25 : vector<16x1xi32>
    %c-8_i32_18 = arith.constant -8 : i32
    %27 = vector.broadcast %c-8_i32_18 : i32 to vector<16x1xi32>
    %28 = arith.andi %24, %27 : vector<16x1xi32>
    %29 = tpu.bitcast %28 : vector<16x1xi32> -> vector<16x1xf32>
    %cst_19 = arith.constant 9.99999993E-9 : f32
    %30 = vector.broadcast %cst_19 : f32 to vector<16x1xf32>
    %31 = arith.addf %29, %30 : vector<16x1xf32>
    %32 = tpu.reciprocal %31 {approx = true} : vector<16x1xf32> -> vector<16x1xf32>
    %33 = arith.addf %22, %32 : vector<16x1xf32>
    %34 = vector.broadcast %26 : vector<16x1xi32> to vector<16x8xi32>
    %35 = arith.cmpi eq, %16, %34 : vector<16x8xi32>
    %cst_20 = arith.constant 0.000000e+00 : f32
    %36 = vector.shape_cast %32 : vector<16x1xf32> to vector<16x1xf32>
    %37 = vector.broadcast %36 : vector<16x1xf32> to vector<16x8xf32>
    %38 = vector.broadcast %cst_20 : f32 to vector<16x8xf32>
    %39 = arith.select %35, %37, %38 : vector<16x8xi1>, vector<16x8xf32>
    %40 = arith.addf %21, %39 : vector<16x8xf32>
    %c2147483647_i32 = arith.constant 2147483647 : i32
    %41 = vector.broadcast %c2147483647_i32 : i32 to vector<16x8xi32>
    %42 = arith.select %35, %41, %20 : vector<16x8xi1>, vector<16x8xi32>
    %cst_21 = arith.constant dense<2147483647> : vector<16xi32>
    %43 = vector.multi_reduction <minsi>, %42, %cst_21 [1] : vector<16x8xi32> to vector<16xi32>
    %44 = vector.shape_cast %43 : vector<16xi32> to vector<16x1xi32>
    %c7_i32_22 = arith.constant 7 : i32
    %45 = vector.broadcast %c7_i32_22 : i32 to vector<16x1xi32>
    %46 = arith.andi %44, %45 : vector<16x1xi32>
    %c-8_i32_23 = arith.constant -8 : i32
    %47 = vector.broadcast %c-8_i32_23 : i32 to vector<16x1xi32>
    %48 = arith.andi %44, %47 : vector<16x1xi32>
    %49 = tpu.bitcast %48 : vector<16x1xi32> -> vector<16x1xf32>
    %cst_24 = arith.constant 9.99999993E-9 : f32
    %50 = vector.broadcast %cst_24 : f32 to vector<16x1xf32>
    %51 = arith.addf %49, %50 : vector<16x1xf32>
    %52 = tpu.reciprocal %51 {approx = true} : vector<16x1xf32> -> vector<16x1xf32>
    %53 = arith.addf %33, %52 : vector<16x1xf32>
    %54 = vector.broadcast %46 : vector<16x1xi32> to vector<16x8xi32>
    %55 = arith.cmpi eq, %16, %54 : vector<16x8xi32>
    %cst_25 = arith.constant 0.000000e+00 : f32
    %56 = vector.shape_cast %52 : vector<16x1xf32> to vector<16x1xf32>
    %57 = vector.broadcast %56 : vector<16x1xf32> to vector<16x8xf32>
    %58 = vector.broadcast %cst_25 : f32 to vector<16x8xf32>
    %59 = arith.select %55, %57, %58 : vector<16x8xi1>, vector<16x8xf32>
    %60 = arith.addf %40, %59 : vector<16x8xf32>
    %c2147483647_i32_26 = arith.constant 2147483647 : i32
    %61 = vector.broadcast %c2147483647_i32_26 : i32 to vector<16x8xi32>
    %62 = arith.select %55, %61, %42 : vector<16x8xi1>, vector<16x8xi32>
    %cst_27 = arith.constant dense<2147483647> : vector<16xi32>
    %63 = vector.multi_reduction <minsi>, %62, %cst_27 [1] : vector<16x8xi32> to vector<16xi32>
    %64 = vector.shape_cast %63 : vector<16xi32> to vector<16x1xi32>
    %c7_i32_28 = arith.constant 7 : i32
    %65 = vector.broadcast %c7_i32_28 : i32 to vector<16x1xi32>
    %66 = arith.andi %64, %65 : vector<16x1xi32>
    %c-8_i32_29 = arith.constant -8 : i32
    %67 = vector.broadcast %c-8_i32_29 : i32 to vector<16x1xi32>
    %68 = arith.andi %64, %67 : vector<16x1xi32>
    %69 = tpu.bitcast %68 : vector<16x1xi32> -> vector<16x1xf32>
    %cst_30 = arith.constant 9.99999993E-9 : f32
    %70 = vector.broadcast %cst_30 : f32 to vector<16x1xf32>
    %71 = arith.addf %69, %70 : vector<16x1xf32>
    %72 = tpu.reciprocal %71 {approx = true} : vector<16x1xf32> -> vector<16x1xf32>
    %73 = arith.addf %53, %72 : vector<16x1xf32>
    %74 = vector.broadcast %66 : vector<16x1xi32> to vector<16x8xi32>
    %75 = arith.cmpi eq, %16, %74 : vector<16x8xi32>
    %cst_31 = arith.constant 0.000000e+00 : f32
    %76 = vector.shape_cast %72 : vector<16x1xf32> to vector<16x1xf32>
    %77 = vector.broadcast %76 : vector<16x1xf32> to vector<16x8xf32>
    %78 = vector.broadcast %cst_31 : f32 to vector<16x8xf32>
    %79 = arith.select %75, %77, %78 : vector<16x8xi1>, vector<16x8xf32>
    %80 = arith.addf %60, %79 : vector<16x8xf32>
    %81 = arith.truncf %80 : vector<16x8xf32> to vector<16x8xbf16>
    %c0_32 = arith.constant 0 : index
    %c0_33 = arith.constant 0 : index
    %c0_34 = arith.constant 0 : index
    %82 = vector.load %arg5[%c0_32, %c0_33, %c0_34] : memref<1x8x4xbf16, #tpu.memory_space<vmem>>, vector<1x8x4xbf16>
    %83 = vector.shape_cast %82 : vector<1x8x4xbf16> to vector<8x4xbf16>
    %cst_35 = arith.constant dense<0.000000e+00> : vector<16x4xf32>
    %84 = tpu.matmul %81, %83, %cst_35 {dimension_numbers = #tpu.dot_dimension_numbers<[1], [0], [0], [1], [0, 0, 1, 1], [], []>} : vector<16x8xbf16>, vector<8x4xbf16>, vector<16x4xf32> -> vector<16x4xf32>
    %85 = tpu.reciprocal %73 {approx = true} : vector<16x1xf32> -> vector<16x1xf32>
    %86 = vector.broadcast %85 : vector<16x1xf32> to vector<16x4xf32>
    %87 = arith.mulf %84, %86 : vector<16x4xf32>
    %88 = arith.addf %8, %87 : vector<16x4xf32>
    %c0_36 = arith.constant 0 : index
    %c0_37 = arith.constant 0 : index
    %c0_38 = arith.constant 0 : index
    %89 = vector.load %arg8[%c0_36, %c0_37, %c0_38] : memref<1x16x4xf32, #tpu.memory_space<vmem>>, vector<1x16x4xf32>
    %90 = vector.shape_cast %89 : vector<1x16x4xf32> to vector<16x4xf32>
    %91 = vector.shape_cast %88 : vector<16x4xf32> to vector<1x16x4xf32>
    tpu.vector_store %arg8[%c0_36, %c0_37, %c0_38], %91 {strides = array<i32>} : memref<1x16x4xf32, #tpu.memory_space<vmem>>, vector<1x16x4xf32>,
    return
  }
  func.func @transform_0(%arg0: i32, %arg1: i32) -> (i32, i32, i32) {
    %c0_i32 = arith.constant 0 : i32
    %c0_i32_0 = arith.constant 0 : i32
    return %arg0, %arg1, %c0_i32 : i32, i32, i32
  }
  func.func @transform_1(%arg0: i32, %arg1: i32) -> (i32, i32, i32) {
    %c0_i32 = arith.constant 0 : i32
    %c0_i32_0 = arith.constant 0 : i32
    return %arg0, %arg1, %c0_i32 : i32, i32, i32
  }
  func.func @transform_2(%arg0: i32, %arg1: i32) -> (i32, i32, i32) {
    %c0_i32 = arith.constant 0 : i32
    %c0_i32_0 = arith.constant 0 : i32
    %c0_i32_1 = arith.constant 0 : i32
    return %arg0, %c0_i32, %c0_i32_0 : i32, i32, i32
  }
  func.func @transform_3(%arg0: i32, %arg1: i32) -> (i32, i32, i32) {
    %c0_i32 = arith.constant 0 : i32
    %c0_i32_0 = arith.constant 0 : i32
    %c0_i32_1 = arith.constant 0 : i32
    return %arg0, %c0_i32, %c0_i32_0 : i32, i32, i32
  }
  func.func @transform_4(%arg0: i32, %arg1: i32) -> (i32, i32) {
    %c0_i32 = arith.constant 0 : i32
    %c0_i32_0 = arith.constant 0 : i32
    %c0_i32_1 = arith.constant 0 : i32
    return %c0_i32, %c0_i32_0 : i32, i32
  }
  func.func @transform_5(%arg0: i32, %arg1: i32) -> (i32, i32) {
    %c0_i32 = arith.constant 0 : i32
    %c0_i32_0 = arith.constant 0 : i32
    %c0_i32_1 = arith.constant 0 : i32
    return %c0_i32, %c0_i32_0 : i32, i32
  }
  func.func @transform_6(%arg0: i32, %arg1: i32) -> (i32, i32, i32) {
    %c0_i32 = arith.constant 0 : i32
    %c0_i32_0 = arith.constant 0 : i32
    return %arg0, %arg1, %c0_i32 : i32, i32, i32
  }
}

</mosaic_0001>

<bundles_post_ra>
// kernel: tpu_custom_call.1
= control target key start
LH: loop header
LB: loop body
LE: loop exit
PB: predicated region body
PF: predicated region fallthrough
CT: control target
= control target key end

     0   :  { %s2102_s0 = inlined_call_operand.hbm [shape: bf16[2,32,4], index: 0, kind: input, shape index: {}]   ;;  %s2103_s1 = inlined_call_operand.hbm [shape: f32[2,32,5], index: 1, kind: input, shape index: {}]   ;;  %s2104_s2 = inlined_call_operand.hbm [shape: f32[2,5,8], index: 2, kind: input, shape index: {}]   ;;  %s2105_s3 = inlined_call_operand.hbm [shape: bf16[2,8,4], index: 3, kind: input, shape index: {}]   ;;  %s2106_s4 = inlined_call_operand.hbm [shape: bf16[4,4], index: 4, kind: input, shape index: {}]   ;;  %s2107_s5 = inlined_call_operand.hbm [shape: f32[1,4], index: 5, kind: input, shape index: {}]   ;;  %s2108_s6 = inlined_call_operand.hbm [shape: f32[2,32,4], index: 6, kind: output, shape index: {}]  }
   0x1   :  { %2136 = sst [smem:[#allocation33_spill]] %s2103_s1 }
   0x2   :  { %2137 = sst [smem:[#allocation34_spill]] %s2106_s4 }
   0x3   :  { %2138 = sst [smem:[#allocation35_spill]] %s2108_s6 }
   0x4   :  { %11 = vsyncpa [#allocation3], 0 }
   0x5   :  { %13 = vsyncpa [#allocation3 + $0x1], 0 }
   0x6   :  { %14 = vsyncpa [#allocation6], 0 }
   0x7   :  { %16 = vsyncpa [#allocation6 + $0x1], 0 }
   0x8   :  { %17 = vsyncpa [#allocation9], 0 }
   0x9   :  { %19 = vsyncpa [#allocation9 + $0x1], 0 }
   0xa   :  { %20 = vsyncpa [#allocation12], 0 }
   0xb   :  { %21 = vsyncpa [#allocation4], 0 }
   0xc   :  { %23 = vsyncpa [#allocation4 + $0x1], 0  ;;  %s1594_s21 = smov 0   ;;  %s1596_s22 = smov 0  }
   0xd   :  { %s1598_s23 = smov 0   ;;  %s1600_s24 = smov 0  }
   0xe   :  { %s1602_s25 = smov 0   ;;  %s1604_s26 = smov 0  }
   0xf   :  { %s1606_s27 = smov 0   ;;  %s1608_s28 = smov 0  }
  0x10   :  { %s1610_s29 = smov 0   ;;  %s1612_s30 = smov 0  }
  0x11   :  { %s1614_s7 = smov 0  }
  0x12 LB: > { %2139 = sst [smem:[#allocation21_spill]] %s1514_s24  ;;  %s1648_s8 = sadd.s32 4294967295, %s1542_s7   ;;  %s1542_s7 = sphi %s1614_s7, %s29_s7   ;;  %s1538_s30 = sphi %s1612_s30, %s2211_s30   ;;  %s1534_s29 = sphi %s1610_s29, %s2202_s29   ;;  %s1530_s28 = sphi %s1608_s28, %s2210_s28   ;;  %s1526_s27 = sphi %s1606_s27, %s2201_s27   ;;  %s1522_s26 = sphi %s1604_s26, %s2209_s26   ;;  %s1518_s25 = sphi %s1602_s25, %s2208_s25   ;;  %s1514_s24 = sphi %s1600_s24, %s2207_s24   ;;  %s1510_s23 = sphi %s1598_s23, %s2206_s23   ;;  %s1506_s22 = sphi %s1596_s22, %s2205_s22   ;;  %s1502_s21 = sphi %s1594_s21, %s2204_s21  }
  0x13   : > { %2140 = sst [smem:[#allocation22_spill]] %s1526_s27  ;;  %s999_s9 = sadd.s32 4294967294, %s1542_s7  }
  0x14   : > { %2141 = sst [smem:[#allocation23_spill]] %s1530_s28  ;;  %p57_p0 = scmp.ne.s32.totalorder %s1522_s26, %s1518_s25 }
  0x15   : > { %2142 = sst [smem:[#allocation24_spill]] %s1534_s29  ;;  %p2109_p1 = scmp.eq.s32.totalorder %s1542_s7, 0 }
  0x16   : > { %2143 = sst [smem:[#allocation25_spill]] %s1648_s8  ;;  %p63_p2 = scmp.ne.s32.totalorder %s1518_s25, %s1514_s24 }
  0x17   : > { %p2115_p3 = scmp.eq.s32.totalorder %s1648_s8, 0  ;;  %p1659_p4 = por %p2109_p1, %p57_p0 }
  0x18   : > { %p117_p5 = scmp.ne.s32.totalorder %s1506_s22, %s1502_s21  ;;  %p211_p7 = scmp.eq.s32.totalorder %s1648_s8, 3 }
  0x19   : > { %s2144_s10 = scalar_select %p1659_p4, 1, 0 }
  0x1a   : > { %p1666_p6 = por %p2115_p3, %p63_p2  ;;  %p1673_p8 = por %p117_p5, %p2115_p3 }
  0x1b   : > { %p217_p9 = scmp.eq.s32.totalorder %s999_s9, 3  ;;  %p1677_p10 = por %p211_p7, %p57_p0 }
  0x1c   : > { %s2145_s11 = scalar_select %p1666_p6, 1, 0 }
  0x1d   : > { %s2147_s12 = scalar_select %p1673_p8, 1, 0 }
  0x1e   : > { %2146 = sst [smem:[#allocation26_spill]] %s2145_s11  ;;  %p1000_p11 = scmp.ge.s32.totalorder %s1542_s7, 1 }
  0x1f   : > { %2148 = sst [smem:[#allocation27_spill]] %s2147_s12  ;;  %p1682_p12 = por %p217_p9, %p63_p2 }
  0x20   : > { %s2149_s13 = scalar_select %p1677_p10, 1, 0 }
  0x21   : > { %s2151_s14 = scalar_select %p1682_p12, 1, 0 }
  0x22   : > { %2150 = sst [smem:[#allocation28_spill]] %s2149_s13  ;;  %p224_p13 = scmp.lt.s32.totalorder %s1542_s7, 5 }
  0x23   : > { %2152 = sst [smem:[#allocation29_spill]] %s2151_s14  ;;  %s1544_s16 = smov [#allocation10]  }
  0x24   : > { %p1687_p1 = pnand %p1000_p11, %p224_p13  ;;  %s237_s17 = sshll.u32 %s1544_s16, 4  ;;  %s238_s17 = int_to_ptr.vmem [resolvable:$true] %s237_s17 }
  0x25   : > { %s38_s19 = sadd.s32 1, %s1534_s29  ;;  %s41_s20 = sadd.s32 1, %s1538_s30 }
  0x26   : > { %s2153_s15 = scalar_select %p1687_p1, 1, 0 }
  0x27   : > { %p1079_p5 = pneg %p1687_p1  ;;  %p1701_p2 = scmp.ge.s32.totalorder %s38_s19, 2 }
  0x28   : > { %s2156_s4 = sld [smem:[#allocation34_spill]] }
  0x29   : > { %p1695_p0 = pnand %p1079_p5, %p2115_p3 }
  0x2a   : > { %s2155_s21 = scalar_select %p1701_p2, 1, 0 }
  0x2b   : > { %p2131_p9 = pneg %p1695_p0 }
  0x2e   : > { %s1224_s16 = scalar_lea.hbm %s2156_s4, 32 }
  0x2f   : > { %p1225_p7 = scmp.ne.s32.totalorder %s2156_s4, %s1224_s16  ;;  %p1231_p5 = scmp.lt.u32.totalorder %s1224_s16, %s2156_s4 }
  0x31   : > { %p1227_p11 = pnand %p2131_p9, %p1225_p7 }
  0x33   : > { %p1228_p13 = pneg %p1227_p11 }
  0x35   : > { %p1233_p3 = pnand %p1231_p5, %p1228_p13 }
  0x37   : > { %1236 = shalt.err (!%p1233_p3)
}
  0x38   : > { %s1237_s27 = scalar_lea.vmem %s238_s17, 32  ;;  %p1245_p6 = scmp.lt.s32.totalorder %s238_s17, %s238_s17 }
  0x39   : > { %p1238_p12 = scmp.ne.s32.totalorder %s238_s17, %s1237_s27  ;;  %p1246_p1 = scmp.lt.s32.totalorder %s1237_s27, %s1237_s27 }
  0x3b   : > { %p1240_p10 = pnand %p1238_p12, %p2131_p9  ;;  %p1247_p4 = por %p1246_p1, %p1245_p6 }
  0x3d   : > { %p1241_p8 = pneg %p1240_p10 }
  0x3f   : > { %p1248_p2 = pnand %p1247_p4, %p1241_p8 }
  0x41   : > { %1251 = shalt.err (!%p1248_p2)
}
  0x42   : > { %1082 = dma.hbm_to_vmem [thread:$0]  (!%p1695_p0), %s2156_s4, 32, %s238_s17, [#allocation9]  }
  0x43   : > { %p2157_p1 = scmp.ne.s32.totalorder %s2155_s21, 0  ;;  %s50_s28 = sadd.s32 1, %s1522_s26 }
  0x44   : > { %p2130_p4 = scmp.lt.s32.totalorder %s1542_s7, 4  ;;  %s1739_s13 = sand.u32 1, %s1522_s26  }
  0x45   : > { %s2213_s19 = smov (%p2157_p1, %s38_s19), 0  ;;  %s2215_s20 = smov (!%p2157_p1, %s41_s20), %s1538_s30 }
  0x46   : > { %2158 = sst [smem:[#allocation30_spill]] %s2213_s19  ;;  %s46_s27 = ssub.s32 %s1534_s29, %s2213_s19 }
  0x47   : > { %p43_p3 = scmp.ge.s32.totalorder %s2215_s20, 2  ;;  %s1005_s14 = sshll.u32 %s1534_s29, 1 }
  0x48   : > { %s1006_s17 = sshll.u32 %s1538_s30, 2  ;;  %p2160_p6 = scmp.ne.s32.totalorder %s2144_s10, 0 }
  0x49   : > { %s2217_s20 = smov (%p43_p3, %s2215_s20), 0  ;;  %s1757_s16 = sadd.s32 %s1006_s17, %s1005_s14 }
  0x4a   : > { %2159 = sst [smem:[#allocation31_spill]] %s2217_s20  ;;  %p1749_p8 = pnand %p2130_p4, %p2160_p6 }
  0x4b   : > { %s1755_s9 = ssub.s32 %s1538_s30, %s2217_s20  ;;  %s2132_s24 = sand.u32 1, %s1542_s7  }
  0x4c   : > { %s2161_s21 = scalar_select %p1749_p8, 1, 0 }
  0x4d   : > { %s47_s6 = sor.u32 %s46_s27, %s1755_s9  ;;  %s1008_s4 = sshll.u32 %s1739_s13, 4 }
  0x4e   : > { %p48_p12 = scmp.eq.s32.totalorder %s47_s6, 0  ;;  %s1011_s19 = sshll.u32 %s1757_s16, 7 }
  0x4f   : > { %s286_s29 = scalar_lea.vmem [#allocation5], %s1008_s4  ;;  %s2163_s1 = sld [smem:[#allocation33_spill]] }
  0x50   : > { %s1764_s10 = scalar_select %p48_p12, %s1522_s26, %s50_s28  }
  0x51   : > { %s295_s12 = sshll.u32 %s286_s29, 4  ;;  %s1776_s27 = scalar_lea.sflag [#allocation6], %s2132_s24  ;;  %s1772_s12 = int_to_ptr.vmem [resolvable:$true] %s295_s12 }
  0x52   : > { %2162 = sst [smem:[#allocation32_spill]] %s1764_s10  ;;  %p2133_p7 = pneg %p1749_p8 }
  0x55   : > { %s1770_s11 = scalar_lea.hbm %s2163_s1, %s1011_s19  ;;  %s1257_s8 = scalar_lea.hbm %s2163_s1, 1024 }
  0x56   : > { %s1252_s14 = scalar_lea.hbm %s1770_s11, 256  ;;  %p1258_p5 = scmp.lt.u32.totalorder %s1770_s11, %s2163_s1 }
  0x57   : > { %p1253_p2 = scmp.ne.s32.totalorder %s1770_s11, %s1252_s14  ;;  %p1259_p1 = scmp.lt.u32.totalorder %s1257_s8, %s1252_s14 }
  0x58   : > { %p1261_p6 = scmp.lt.u32.totalorder %s1252_s14, %s1770_s11 }
  0x59   : > { %p1255_p11 = pnand %p2133_p7, %p1253_p2  ;;  %p1260_p3 = por %p1259_p1, %p1258_p5 }
  0x5b   : > { %p1256_p13 = pneg %p1255_p11  ;;  %p1262_p12 = por %p1261_p6, %p1260_p3 }
  0x5d   : > { %p1263_p4 = pnand %p1262_p12, %p1256_p13 }
  0x5f   : > { %1266 = shalt.err (!%p1263_p4)
}
  0x60   : > { %s1267_s28 = scalar_lea.vmem %s1772_s12, 256  ;;  %s1545_s17 = smov [#allocation5]  }
  0x61   : > { %p1268_p2 = scmp.ne.s32.totalorder %s1772_s12, %s1267_s28  ;;  %s1272_s6 = sshll.u32 %s1545_s17, 4  ;;  %s1273_s6 = int_to_ptr.vmem [resolvable:$false] %s1272_s6 }
  0x62   : > { %s1274_s4 = scalar_lea.vmem %s1273_s6, 512  ;;  %p1275_p9 = scmp.lt.s32.totalorder %s1772_s12, %s1273_s6 }
  0x63   : > { %p1270_p11 = pnand %p1268_p2, %p2133_p7  ;;  %p1276_p5 = scmp.lt.s32.totalorder %s1274_s4, %s1267_s28 }
  0x65   : > { %p1271_p10 = pneg %p1270_p11  ;;  %p1277_p1 = por %p1276_p5, %p1275_p9 }
  0x67   : > { %p1278_p3 = pnand %p1277_p1, %p1271_p10 }
  0x69   : > { %1281 = shalt.err (!%p1278_p3)
}
  0x6a   : > { %s1546_s14 = smov 128   ;;  %s1547_s29 = smov 8  }
  0x6b   : > { %1092 = dma.hbm_to_vmem [thread:$0]  (!%p1749_p8), %s1770_s11, 256, %s1772_s12, %s1776_s27, %s1546_s14, %s1546_s14, %s1547_s29  }
  0x6c   : > { %s1548_s8 = smov [#allocation11]   ;;  %s1004_s20 = sshll.u32 %s1739_s13, 3 }
  0x6d   : > { %s248_s19 = sshll.u32 %s1548_s8, 4  ;;  %s1282_s28 = scalar_lea.hbm %s2107_s5, 16  ;;  %s249_s19 = int_to_ptr.vmem [resolvable:$true] %s248_s19 }
  0x6e   : > { %p1283_p9 = scmp.ne.s32.totalorder %s2107_s5, %s1282_s28  ;;  %p2164_p4 = pneg %p1695_p0 }
  0x6f   : > { %p1289_p6 = scmp.lt.u32.totalorder %s1282_s28, %s2107_s5 }
  0x70   : > { %p1285_p10 = pnand %p1283_p9, %p2164_p4 }
  0x72   : > { %p1286_p13 = pneg %p1285_p10 }
  0x74   : > { %p1291_p12 = pnand %p1289_p6, %p1286_p13 }
  0x76   : > { %1294 = shalt.err (!%p1291_p12)
}
  0x77   : > { %s1295_s11 = scalar_lea.vmem %s249_s19, 16  ;;  %p2165_p11 = pmov %p2164_p4 }
  0x78   : > { %p1296_p2 = scmp.ne.s32.totalorder %s249_s19, %s1295_s11  ;;  %s1302_s12 = scalar_lea.vmem %s249_s19, 32 }
  0x79   : > { %p1303_p3 = scmp.lt.s32.totalorder %s249_s19, %s249_s19  ;;  %p1304_p7 = scmp.lt.s32.totalorder %s1302_s12, %s1295_s11 }
  0x7a   : > { %p1298_p5 = pnand %p1296_p2, %p2165_p11 }
  0x7b   : > { %p1305_p8 = por %p1304_p7, %p1303_p3 }
  0x7c   : > { %p1299_p1 = pneg %p1298_p5 }
  0x7e   : > { %p1306_p4 = pnand %p1305_p8, %p1299_p1 }
  0x80   : > { %1309 = shalt.err (!%p1306_p4)
}
  0x81   : > { %1085 = dma.hbm_to_vmem [thread:$0]  (!%p1695_p0), %s2107_s5, 16, %s249_s19, [#allocation12]  }
  0x82   : > { %s1007_s10 = sshll.u32 %s1757_s16, 6  ;;  %s263_s14 = scalar_lea.vmem [#allocation2], %s1004_s20 }
  0x83   : > { %s272_s29 = sshll.u32 %s263_s14, 4  ;;  %s1829_s6 = scalar_lea.hbm %s2102_s0, %s1007_s10  ;;  %s1831_s29 = int_to_ptr.vmem [resolvable:$true] %s272_s29 }
  0x84   : > { %s260_s18 = scalar_lea.sflag [#allocation3], %s1739_s13  ;;  %s1310_s28 = scalar_lea.hbm %s1829_s6, 128 }
  0x85   : > { %p1311_p8 = scmp.ne.s32.totalorder %s1829_s6, %s1310_s28  ;;  %p2166_p7 = scmp.ne.s32.totalorder %s2161_s21, 0 }
  0x86   : > { %s1315_s20 = scalar_lea.hbm %s2102_s0, 512  ;;  %p1316_p13 = scmp.lt.u32.totalorder %s1829_s6, %s2102_s0 }
  0x87   : > { %p2167_p9 = pneg %p2166_p7  ;;  %p1317_p6 = scmp.lt.u32.totalorder %s1315_s20, %s1310_s28 }
  0x88   : > { %p1319_p2 = scmp.lt.u32.totalorder %s1310_s28, %s1829_s6 }
  0x89   : > { %p1313_p0 = pnand %p1311_p8, %p2167_p9  ;;  %p1318_p12 = por %p1317_p6, %p1316_p13 }
  0x8b   : > { %p1314_p10 = pneg %p1313_p0  ;;  %p1320_p11 = por %p1319_p2, %p1318_p12 }
  0x8d   : > { %p1321_p5 = pnand %p1320_p11, %p1314_p10 }
  0x8f   : > { %1324 = shalt.err (!%p1321_p5)
}
  0x90   : > { %s1325_s12 = scalar_lea.vmem %s1831_s29, 128  ;;  %p2168_p3 = pmov %p2167_p9 }
  0x91   : > { %p1326_p1 = scmp.ne.s32.totalorder %s1831_s29, %s1325_s12  ;;  %s1549_s24 = smov [#allocation2]  }
  0x92   : > { %s1330_s1 = sshll.u32 %s1549_s24, 4  ;;  %s1331_s1 = int_to_ptr.vmem [resolvable:$false] %s1330_s1 }
  0x93   : > { %p1328_p4 = pnand %p1326_p1, %p2168_p3  ;;  %s1332_s10 = scalar_lea.vmem %s1331_s1, 256 }
  0x94   : > { %p1333_p9 = scmp.lt.s32.totalorder %s1831_s29, %s1331_s1  ;;  %p1334_p0 = scmp.lt.s32.totalorder %s1332_s10, %s1325_s12 }
  0x95   : > { %p1329_p8 = pneg %p1328_p4 }
  0x96   : > { %p1335_p13 = por %p1334_p0, %p1333_p9 }
  0x98   : > { %p1336_p6 = pnand %p1335_p13, %p1329_p8 }
  0x9a   : > { %1339 = shalt.err (!%p1336_p6)
}
  0x9b   : > { %s1550_s14 = smov 64   ;;  %s1551_s8 = smov 4  }
  0x9c   : > { %1089 = dma.hbm_to_vmem [thread:$0]  (!%p2166_p7), %s1829_s6, 128, %s1831_s29, %s260_s18, %s1550_s14, %s1550_s14, %s1551_s8  }
  0x9d   : > { %s1013_s17 = sshll.u32 %s1538_s30, 7  ;;  %s104_s20 = sadd.s32 1, %s1510_s23 }
  0x9e   : > { %s1863_s19 = scalar_lea.hbm %s2104_s2, %s1013_s17  ;;  %p111_p10 = scmp.ne.s32.totalorder %s1510_s23, %s1506_s22 }
  0x9f   : > { %p2169_p12 = scmp.eq.s32.totalorder %s1755_s9, 0  ;;  %p2170_p2 = scmp.eq.s32.totalorder %s1542_s7, 0 }
  0xa0   : > { %s307_s11 = sand.u32 1, %s1510_s23   ;;  %p2171_p7 = scmp.lt.s32.totalorder %s1542_s7, 4 }
  0xa1   : > { %s1871_s4 = scalar_select %p2169_p12, %s1510_s23, %s104_s20  }
  0xa2   : > { %p113_p11 = por %p111_p10, %p2170_p2  ;;  %s1012_s13 = sshll.u32 %s307_s11, 3 }
  0xa3   : > { %s309_s29 = scalar_lea.vmem [#allocation7], %s1012_s13  ;;  %s1882_s18 = sshll.u32 %s307_s11, 2 }
  0xa4   : > { %p1878_p5 = pnand %p2171_p7, %p113_p11  ;;  %s316_s6 = sshll.u32 %s309_s29, 4  ;;  %s317_s6 = int_to_ptr.vmem [resolvable:$true] %s316_s6 }
  0xa5   : > { %s1340_s9 = scalar_lea.hbm %s1863_s19, 128  ;;  %s1345_s1 = scalar_lea.hbm %s2104_s2, 256 }
  0xa6   : > { %p1341_p1 = scmp.ne.s32.totalorder %s1863_s19, %s1340_s9  ;;  %p1342_p3 = pneg %p1878_p5 }
  0xa7   : > { %p1346_p9 = scmp.lt.u32.totalorder %s1863_s19, %s2104_s2  ;;  %p1347_p0 = scmp.lt.u32.totalorder %s1345_s1, %s1340_s9 }
  0xa8   : > { %p1343_p4 = pnand %p1342_p3, %p1341_p1  ;;  %p1349_p6 = scmp.lt.u32.totalorder %s1340_s9, %s1863_s19 }
  0xa9   : > { %p1348_p13 = por %p1347_p0, %p1346_p9 }
  0xaa   : > { %p1344_p8 = pneg %p1343_p4 }
  0xab   : > { %p1350_p10 = por %p1349_p6, %p1348_p13 }
  0xad   : > { %p1351_p12 = pnand %p1350_p10, %p1344_p8 }
  0xaf   : > { %1354 = shalt.err (!%p1351_p12)
}
  0xb0   : > { %s1355_s8 = scalar_lea.vmem %s317_s6, 128  ;;  %s1552_s17 = smov [#allocation7]  }
  0xb1   : > { %p1356_p2 = scmp.ne.s32.totalorder %s317_s6, %s1355_s8  ;;  %s1360_s28 = sshll.u32 %s1552_s17, 4  ;;  %s1361_s28 = int_to_ptr.vmem [resolvable:$false] %s1360_s28 }
  0xb2   : > { %s1362_s16 = scalar_lea.vmem %s1361_s28, 256  ;;  %p1363_p1 = scmp.lt.s32.totalorder %s317_s6, %s1361_s28 }
  0xb3   : > { %p1358_p11 = pnand %p1356_p2, %p1342_p3  ;;  %p1364_p4 = scmp.lt.s32.totalorder %s1362_s16, %s1355_s8 }
  0xb5   : > { %p1359_p7 = pneg %p1358_p11  ;;  %p1365_p0 = por %p1364_p4, %p1363_p1 }
  0xb7   : > { %p1366_p9 = pnand %p1365_p0, %p1359_p7 }
  0xb9   : > { %1369 = shalt.err (!%p1366_p9)
}
  0xba   : > { %1095 = dma.hbm_to_vmem [thread:$0]  (!%p1878_p5), %s1863_s19, 128, %s317_s6, %s1776_s27  }
  0xbb   : > { %s1015_s20 = sshll.u32 %s1538_s30, 6  ;;  %s327_s9 = scalar_lea.vmem [#allocation8], %s1882_s18 }
  0xbc   : > { %s1910_s29 = scalar_lea.hbm %s2105_s3, %s1015_s20  ;;  %s334_s12 = sshll.u32 %s327_s9, 4  ;;  %s335_s12 = int_to_ptr.vmem [resolvable:$true] %s334_s12 }
  0xbd   : > { %s2173_s24 = sand.u32 1, %s1542_s7   ;;  %s1370_s10 = scalar_lea.hbm %s1910_s29, 64 }
  0xbe   : > { %s324_s1 = scalar_lea.sflag [#allocation9], %s2173_s24  ;;  %p1371_p8 = scmp.ne.s32.totalorder %s1910_s29, %s1370_s10 }
  0xbf   : > { %s1375_s6 = scalar_lea.hbm %s2105_s3, 128  ;;  %p1376_p10 = scmp.lt.u32.totalorder %s1910_s29, %s2105_s3 }
  0xc0   : > { %p1373_p13 = pnand %p1371_p8, %p1342_p3  ;;  %p1377_p12 = scmp.lt.u32.totalorder %s1375_s6, %s1370_s10 }
  0xc1   : > { %p1379_p11 = scmp.lt.u32.totalorder %s1370_s10, %s1910_s29 }
  0xc2   : > { %p1374_p6 = pneg %p1373_p13  ;;  %p1378_p2 = por %p1377_p12, %p1376_p10 }
  0xc4   : > { %p1380_p7 = por %p1379_p11, %p1378_p2 }
  0xc6   : > { %p1381_p1 = pnand %p1380_p7, %p1374_p6 }
  0xc8   : > { %1384 = shalt.err (!%p1381_p1)
}
  0xc9   : > { %s1385_s18 = scalar_lea.vmem %s335_s12, 64  ;;  %s1553_s17 = smov [#allocation8]  }
  0xca   : > { %p1386_p4 = scmp.ne.s32.totalorder %s335_s12, %s1385_s18  ;;  %s1390_s28 = sshll.u32 %s1553_s17, 4  ;;  %s1391_s28 = int_to_ptr.vmem [resolvable:$false] %s1390_s28 }
  0xcb   : > { %s1392_s16 = scalar_lea.vmem %s1391_s28, 128  ;;  %p1393_p8 = scmp.lt.s32.totalorder %s335_s12, %s1391_s28 }
  0xcc   : > { %p1388_p0 = pnand %p1386_p4, %p1342_p3  ;;  %p1394_p13 = scmp.lt.s32.totalorder %s1392_s16, %s1385_s18 }
  0xce   : > { %p1389_p9 = pneg %p1388_p0  ;;  %p1395_p10 = por %p1394_p13, %p1393_p8 }
  0xd0   : > { %p1396_p12 = pnand %p1395_p10, %p1389_p9 }
  0xd2   : > { %1399 = shalt.err (!%p1396_p12)
}
  0xd3   : > { %1098 = dma.hbm_to_vmem [thread:$0]  (!%p1878_p5), %s1910_s29, 64, %s335_s12, %s324_s1  }
  0xd4   : > { %p2174_p6 = scmp.ne.s32.totalorder %s2153_s15, 0 }
  0xd5   : > { %s2175_s20 = sld [smem:[#allocation26_spill]] (!%p2174_p6)  ;;  %s1937_s11 = sand.u32 (!%p2174_p6), 1, %s1518_s25  }
  0xd6   : > { %343 = sbr.rel (%p2174_p6) target bundleno = 1621 (0x655), region = 44  ;;  %s1017_s13 = sshll.u32 (!%p2174_p6), %s1937_s11, 3 }
  0xd7   : > { %s346_s9 = scalar_lea.sflag (!%p2174_p6), [#allocation3], %s1937_s11  ;;  %s1941_s24 = scalar_lea.vmem (!%p2174_p6), [#allocation2], %s1017_s13 }
  0xdb   : > { %p2176_p3 = scmp.ne.s32.totalorder (!%p2174_p6), %s2175_s20, 0 }
  0xdd   : > { %1473 = dma.done.wait (%p2176_p3), %s346_s9, 128  }
  0xde   : > { %1475 = vsyncadd (%p2176_p3), %s346_s9, 4294967168  ;;  %s2177_s21 = sld [smem:[#allocation25_spill]]  ;;  %s1018_s29 = sshll.u32 %s1937_s11, 4 }
  0xdf   : > { %s358_s1 = scalar_lea.vmem [#allocation5], %s1018_s29 }
  0xe4   : > { %s354_s15 = sand.u32 1, %s2177_s21  }
  0xe5   : > { %s355_s12 = scalar_lea.sflag [#allocation6], %s354_s15 }
  0xe6   : > { %1477 = dma.done.wait (%p2176_p3), %s355_s12, 256  }
  0xe7   : > { %1479 = vsyncadd (%p2176_p3), %s355_s12, 4294967040  ;;  %s2178_s10 = sld [smem:[#allocation27_spill]]  ;;  %s365_s27 = sand.u32 1, %s1506_s22  }
  0xe8   : > { %s1019_s19 = sshll.u32 %s365_s27, 3 }
  0xe9   : > { %s367_s6 = scalar_lea.vmem [#allocation7], %s1019_s19 }
  0xed   : > { %p2179_p5 = scmp.ne.s32.totalorder %s2178_s10, 0 }
  0xef   : > { %1481 = dma.done.wait (%p2179_p5), %s355_s12, 128  }
  0xf0   : > { %1483 = vsyncadd (%p2179_p5), %s355_s12, 4294967168  ;;  %s1960_s14 = sshll.u32 %s365_s27, 2  ;;  %s373_s8 = scalar_lea.sflag [#allocation9], %s354_s15 }
  0xf1   : > { %s376_s18 = scalar_lea.vmem [#allocation8], %s1960_s14 }
  0xf2   : > { %1485 = dma.done.wait (%p2179_p5), %s373_s8, 64  }
  0xf3   : > { %1487 = vsyncadd (%p2179_p5), %s373_s8, 4294967232  ;;  %p2180_p2 = scmp.eq.s32.totalorder %s2177_s21, 0 }
  0xf5   : > { %1489 = dma.done.wait (%p2180_p2), [#allocation9], 32   ;;  %p2181_p11 = pmov %p2180_p2 }
  0xf6   : > { %p2182_p7 = pmov %p2180_p2 }
  0xf7   : > { %1491 = vsyncadd (%p2181_p11), [#allocation9], 4294967264 }
  0xf8   : > { %1493 = dma.done.wait (%p2182_p7), [#allocation12], 16   ;;  %p2183_p1 = pmov %p2180_p2 }
  0xf9   : > { %vm508_vm0 = vcmask 1044480   ;;  %vm501_vm1 = vcmask 39936   ;;  %v500_v0 = vld [vmem:[%s367_s6] sm:$0x1f]  ;;  %v499_v2 = vld [vmem:[%s358_s1 + $0x8] sm:$0xff]  ;;  %v589_v3 = vlaneseq  ;;  %vm597_vm2 = vcmask 64512  }
  0xfa   : > { %1495 = vsyncadd (%p2183_p1), [#allocation12], 4294967280  ;;  %v498_v1 = vld [vmem:[%s358_s1] sm:$0xff]  ;;  %1050 = vmatprep.subr.msk.mxu1 %vm508_vm0, %v500_v0  ;;  %vm451_vm13 = vcmask 1041408   ;;  %v1554_v43 = vmov 0.0   ;;  %vm1555_vm14 = vmmov 0  }
  0xfb   : > { %1052 = vmatprep.mubr.msk.f32.mxu1 %vm501_vm1, %v498_v1  ;;  %1051 = vmatpush3.msk.msra.mxu1 %vm508_vm0, %v500_v0  ;;  %v1975_v6 = vand.u32 127, %v589_v3  ;;  %vm447_vm15 = vcmask 31744   ;;  %vm751_vm0 = vcmask 1043456   ;;  %s2192_s17 = sld [smem:[#allocation22_spill]]  ;;  %s2193_s28 = sld [smem:[#allocation23_spill]] }
  0xfc   : > { %1053 = vmatmul.mubr.msk.f32.vlgmr.msra.gmra.mrb[0].mxu1 %vm501_vm1, %v499_v2  ;;  %1044 = vmatprep.subr.bf16.mxu0 %v1554_v43  ;;  %s2194_s21 = sld [smem:[#allocation28_spill]]  ;;  %s2195_s10 = sld [smem:[#allocation35_spill]] }
  0xfd   : > { %1055 = vmatprep.subr.bf16.mxu1 %v1554_v43  ;;  %1046 = vmatprep.mubr.msk.bf16.mxu0 %vm1555_vm14, %v1554_v43  ;;  %s1556_s6 = smov [#allocation13]  }
  0xfe   : > { %1057 = vmatprep.mubr.msk.bf16.mxu1 %vm1555_vm14, %v1554_v43  ;;  %s1404_s14 = sshll.u32 %s1556_s6, 4  ;;  %s1405_s14 = int_to_ptr.vmem [resolvable:$false] %s1404_s14 }
  0xff   : > { %s1406_s8 = scalar_lea.vmem %s1405_s14, 512 }
 0x101   : > { %s1032_s16 = sshll.u32 %s2192_s17, 1  ;;  %s1033_s20 = sshll.u32 %s2193_s28, 2 }
 0x102   : > { %s817_s13 = sadd.s32 %s1033_s20, %s1032_s16  ;;  %p2196_p0 = scmp.ne.s32.totalorder %s2194_s21, 0 }
 0x103   : > { %s1034_s9 = sshll.u32 %s817_s13, 7 }
 0x104   : > { %s2035_s27 = scalar_lea.hbm %s2195_s10, %s1034_s9 }
 0x1cf   : > { %v1054_v4 = vpop.f32.mrb[0].mxu1 }
 0x1d0   : > { %v588_v5 = vmax.f32 %v1054_v4, 0.0  ;;  %v578_v7 = vpop.f32.mrb[1].mxu1 }
 0x1d1   : > { %v587_v8 = vmax.f32 %v578_v7, 0.0 }
 0x1d2   : > { %v594_v9 = vand.u32 4294967288, %v588_v5 }
 0x1d3   : > { %v593_v10 = vand.u32 4294967288, %v587_v8 }
 0x1d4   : > { %v596_v11 = vor.u32 %v594_v9, %v1975_v6 }
 0x1d5   : > { %v595_v12 = vor.u32 %v593_v10, %v1975_v6 }
 0x1d6   : > { %v613_v14 = vsel %vm597_vm2, %v596_v11, 2147483647 }
 0x1d7   : > { %v598_v13 = vsel %vm597_vm2, %v595_v12, 2147483647  ;;  %v615_v17 = vshra.s32 %v613_v14, 16  ;;  %v614_v22 = vand.u32 65535, %v613_v14 }
 0x1d8   : > { %v600_v15 = vshra.s32 %v598_v13, 16  ;;  %v599_v19 = vand.u32 65535, %v598_v13 }
 0x1d9   : > { %v617_v18 = vcvt.s32.f32 %v615_v17  ;;  %v616_v25 = vcvt.s32.f32 %v614_v22 }
 0x1da   : > { %v602_v16 = vcvt.s32.f32 %v600_v15  ;;  %v601_v21 = vcvt.s32.f32 %v599_v19 }
 0x1dc   : > { %603 = vmin.xlane.f32.xlu0 %v602_v16 }
 0x1e0   : > { %618 = vmin.xlane.f32.xlu0 %v617_v18 }
 0x269   : > { %v604_v20 = vpop.xlane.xlu0 %603 }
 0x26a   : > { %vm605_vm3 = vcmp.eq.f32.partialorder %v602_v16, %v604_v20  ;;  %v610_v27 = vcvt.f32.s32 %v604_v20 }
 0x26b   : > { %v606_v23 = vsel %vm605_vm3, %v601_v21, inf }
 0x26c   : > { %607 = vmin.xlane.f32.xlu1 %v606_v23  ;;  %v611_v29 = vshll.u32 %v610_v27, 16 }
 0x26d   : > { %v619_v24 = vpop.xlane.xlu0 %618 }
 0x26e   : > { %vm620_vm4 = vcmp.eq.f32.partialorder %v617_v18, %v619_v24  ;;  %v625_v30 = vcvt.f32.s32 %v619_v24 }
 0x26f   : > { %v621_v26 = vsel %vm620_vm4, %v616_v25, inf }
 0x270   : > { %622 = vmin.xlane.f32.xlu1 %v621_v26  ;;  %v626_v34 = vshll.u32 %v625_v30, 16 }
 0x2f9   : > { %v608_v28 = vpop.xlane.xlu1 %607 }
 0x2fa   : > { %v609_v31 = vcvt.f32.s32 %v608_v28 }
 0x2fc   : > { %v612_v32 = vadd.s32 %v611_v29, %v609_v31 }
 0x2fd   : > { %v623_v33 = vpop.xlane.xlu1 %622 }
 0x2fe   : > { %v628_v35 = vand.u32 7, %v612_v32  ;;  %v624_v36 = vcvt.f32.s32 %v623_v33  ;;  %v630_v58 = vand.u32 4294967288, %v612_v32 }
 0x300   : > { %v627_v37 = vadd.s32 %v626_v34, %v624_v36  ;;  %vm1982_vm5 = vcmp.eq.s32.totalorder %v1975_v6, %v628_v35  ;;  %v634_v63 = vadd.f32 1e-08, %v630_v58 }
 0x301   : > { %v646_v39 = vsel %vm1982_vm5, 2147483647, %v595_v12 }
 0x302   : > { %v629_v40 = vand.u32 7, %v627_v37  ;;  %v648_v41 = vsel %vm597_vm2, %v646_v39, 2147483647  ;;  %v631_v0 = vand.u32 4294967288, %v627_v37  ;;  %1208 = vrcp.f32 %v634_v63 }
 0x303   : > { %v650_v42 = vshra.s32 %v648_v41, 16  ;;  %v649_v49 = vand.u32 65535, %v648_v41 }
 0x304   : > { %vm1990_vm6 = vcmp.eq.s32.totalorder %v1975_v6, %v629_v40  ;;  %v635_v8 = vadd.f32 1e-08, %v631_v0 }
 0x305   : > { %v652_v44 = vcvt.s32.f32 %v650_v42  ;;  %v647_v45 = vsel %vm1990_vm6, 2147483647, %v596_v11  ;;  %v651_v51 = vcvt.s32.f32 %v649_v49  ;;  %v434_v42 = vld [vmem:[#allocation10] sm:$0x3] }
 0x306   : > { %v663_v46 = vsel %vm597_vm2, %v647_v45, 2147483647 }
 0x307   : > { %653 = vmin.xlane.f32.xlu0 %v652_v44  ;;  %v665_v47 = vshra.s32 %v663_v46, 16  ;;  %v664_v52 = vand.u32 65535, %v663_v46  ;;  %v747_v46 = vld [vmem:[%s376_s18] sm:$0xf] }
 0x309   : > { %v667_v48 = vcvt.s32.f32 %v665_v47  ;;  %v666_v55 = vcvt.s32.f32 %v664_v52  ;;  %v753_v47 = vsel %vm751_vm0, %v747_v46, 0 }
 0x30a   : > { %1056 = vmatpush3.bf16.msra.mxu1 %v753_v47 }
 0x30b   : > { %668 = vmin.xlane.f32.xlu1 %v667_v48 }
 0x30c   : > { %v1209_v23 = vpop.eup %1208 }
 0x30d   : > { %v642_v26 = vsel %vm1982_vm5, %v1209_v23, 0.0 }
 0x394   : > { %v654_v50 = vpop.xlane.xlu0 %653 }
 0x395   : > { %vm655_vm7 = vcmp.eq.f32.partialorder %v652_v44, %v654_v50  ;;  %v660_v57 = vcvt.f32.s32 %v654_v50  ;;  %v453_v44 = vsel %vm451_vm13, %v434_v42, 0 }
 0x396   : > { %v656_v53 = vsel %vm655_vm7, %v651_v51, inf  ;;  %1045 = vmatpush3.bf16.msra.mxu0 %v453_v44 }
 0x397   : > { %657 = vmin.xlane.f32.xlu0 %v656_v53  ;;  %v661_v60 = vshll.u32 %v660_v57, 16 }
 0x398   : > { %v669_v54 = vpop.xlane.xlu1 %668 }
 0x399   : > { %vm670_vm8 = vcmp.eq.f32.partialorder %v667_v48, %v669_v54  ;;  %v675_v61 = vcvt.f32.s32 %v669_v54 }
 0x39a   : > { %v671_v56 = vsel %vm670_vm8, %v666_v55, inf }
 0x39b   : > { %672 = vmin.xlane.f32.xlu1 %v671_v56  ;;  %v676_v3 = vshll.u32 %v675_v61, 16 }
 0x424   : > { %v658_v59 = vpop.xlane.xlu0 %657 }
 0x425   : > { %v659_v62 = vcvt.f32.s32 %v658_v59 }
 0x427   : > { %v662_v1 = vadd.s32 %v661_v60, %v659_v62 }
 0x428   : > { %v673_v2 = vpop.xlane.xlu1 %672 }
 0x429   : > { %v678_v4 = vand.u32 7, %v662_v1  ;;  %v680_v5 = vand.u32 4294967288, %v662_v1  ;;  %v674_v7 = vcvt.f32.s32 %v673_v2 }
 0x42b   : > { %v684_v9 = vadd.f32 1e-08, %v680_v5  ;;  %v677_v10 = vadd.s32 %v676_v3, %v674_v7  ;;  %vm1998_vm9 = vcmp.eq.s32.totalorder %v1975_v6, %v678_v4 }
 0x42c   : > { %v696_v12 = vsel %vm1998_vm9, 2147483647, %v646_v39 }
 0x42d   : > { %1210 = vrcp.f32 %v684_v9  ;;  %v679_v13 = vand.u32 7, %v677_v10  ;;  %v681_v14 = vand.u32 4294967288, %v677_v10  ;;  %v698_v15 = vsel %vm597_vm2, %v696_v12, 2147483647 }
 0x42e   : > { %v700_v16 = vshra.s32 %v698_v15, 16  ;;  %1212 = vrcp.f32 %v635_v8  ;;  %v699_v34 = vand.u32 65535, %v698_v15 }
 0x42f   : > { %v685_v17 = vadd.f32 1e-08, %v681_v14  ;;  %vm2006_vm10 = vcmp.eq.s32.totalorder %v1975_v6, %v679_v13 }
 0x430   : > { %v702_v19 = vcvt.s32.f32 %v700_v16  ;;  %v697_v20 = vsel %vm2006_vm10, 2147483647, %v647_v45  ;;  %v701_v36 = vcvt.s32.f32 %v699_v34  ;;  %v1207_v45 = vld [vmem:[%s1941_s24] sm:$0xff]   ;;  %s427_s24 = scalar_lea.vmem [#allocation13], %s1018_s29  ;;  %s805_s29 = scalar_lea.sflag [#allocation4], %s1937_s11 }
 0x431   : > { %1214 = vrcp.f32 %v685_v17  ;;  %v713_v21 = vsel %vm597_vm2, %v697_v20, 2147483647  ;;  %1047 = vmatmul.mubr.msk.bf16.vlgmr.msra.gmra.mrb[0].mxu0 %vm447_vm15, %v1207_v45  ;;  %v1024_v16 = vld [vmem:[#allocation11] ss:$0 sm:$0xff]  ;;  %s820_s15 = sshll.u32 %s427_s24, 4  ;;  %s2037_s15 = int_to_ptr.vmem [resolvable:$true] %s820_s15 }
 0x432   : > { %703 = vmin.xlane.f32.xlu0 %v702_v19  ;;  %v715_v22 = vshra.s32 %v713_v21, 16  ;;  %v714_v37 = vand.u32 65535, %v713_v21  ;;  %s1400_s19 = scalar_lea.vmem %s2037_s15, 256  ;;  %p1407_p13 = scmp.lt.s32.totalorder %s2037_s15, %s1405_s14 }
 0x433   : > { %p1401_p4 = scmp.ne.s32.totalorder %s2037_s15, %s1400_s19  ;;  %p1408_p10 = scmp.lt.s32.totalorder %s1406_s8, %s1400_s19 }
 0x434   : > { %v717_v24 = vcvt.s32.f32 %v715_v22  ;;  %v716_v40 = vcvt.s32.f32 %v714_v37 }
 0x435   : > { %p1402_p9 = pnand %p1401_p4, %p2196_p0  ;;  %p1409_p12 = por %p1408_p10, %p1407_p13 }
 0x436   : > { %718 = vmin.xlane.f32.xlu1 %v717_v24 }
 0x437   : > { %v1211_v25 = vpop.eup %1210  ;;  %p1403_p8 = pneg %p1402_p9 }
 0x438   : > { %v692_v27 = vsel %vm1998_vm9, %v1211_v25, 0.0  ;;  %v1213_v28 = vpop.eup %1212  ;;  %v688_v63 = vadd.f32 %v1211_v25, %v1209_v23 }
 0x439   : > { %v694_v29 = vadd.f32 %v692_v27, %v642_v26  ;;  %v643_v31 = vsel %vm1990_vm6, %v1213_v28, 0.0  ;;  %p1410_p6 = pnand %p1409_p12, %p1403_p8 }
 0x43b   : > { %v1215_v30 = vpop.eup %1214 }
 0x43c   : > { %v693_v32 = vsel %vm2006_vm10, %v1215_v30, 0.0  ;;  %v689_v4 = vadd.f32 %v1215_v30, %v1213_v28 }
 0x43d   : > { %v695_v33 = vadd.f32 %v693_v32, %v643_v31 }
 0x4bf   : > { %v704_v35 = vpop.xlane.xlu0 %703 }
 0x4c0   : > { %vm705_vm11 = vcmp.eq.f32.partialorder %v702_v19, %v704_v35  ;;  %v710_v48 = vcvt.f32.s32 %v704_v35 }
 0x4c1   : > { %v706_v38 = vsel %vm705_vm11, %v701_v36, inf }
 0x4c2   : > { %707 = vmin.xlane.f32.xlu0 %v706_v38  ;;  %v711_v50 = vshll.u32 %v710_v48, 16 }
 0x4c3   : > { %v719_v39 = vpop.xlane.xlu1 %718 }
 0x4c4   : > { %vm720_vm12 = vcmp.eq.f32.partialorder %v717_v24, %v719_v39  ;;  %v725_v51 = vcvt.f32.s32 %v719_v39 }
 0x4c5   : > { %v721_v41 = vsel %vm720_vm12, %v716_v40, inf }
 0x4c6   : > { %722 = vmin.xlane.f32.xlu1 %v721_v41  ;;  %v726_v55 = vshll.u32 %v725_v51, 16 }
 0x504   : > { %v489_v12 = vpop.f32.mrb[0].mxu0 }
 0x505   : > { %v1048_v13 = vpop.f32.mrb[1].mxu0  ;;  %v490_v17 = vadd.f32 %v1024_v16, %v489_v12 }
 0x506   : > { %v492_v14 = vpop.f32.mrb[2].mxu0 }
 0x507   : > { %v1049_v15 = vpop.f32.mrb[3].mxu0  ;;  %v493_v18 = vadd.f32 %v1024_v16, %v492_v14 }
 0x509   : > { %v497_v25 = vmax.f32 %v493_v18, 0.0 }
 0x54f   : > { %v708_v49 = vpop.xlane.xlu0 %707 }
 0x550   : > { %v709_v52 = vcvt.f32.s32 %v708_v49 }
 0x552   : > { %v712_v53 = vadd.s32 %v711_v50, %v709_v52 }
 0x553   : > { %v723_v54 = vpop.xlane.xlu1 %722 }
 0x554   : > { %v730_v56 = vand.u32 4294967288, %v712_v53  ;;  %v724_v57 = vcvt.f32.s32 %v723_v54  ;;  %v728_v62 = vand.u32 7, %v712_v53 }
 0x556   : > { %v734_v58 = vadd.f32 1e-08, %v730_v56  ;;  %v727_v59 = vadd.s32 %v726_v55, %v724_v57  ;;  %vm740_vm1 = vcmp.eq.s32.totalorder %v1975_v6, %v728_v62 }
 0x558   : > { %1216 = vrcp.f32 %v734_v58  ;;  %v731_v60 = vand.u32 4294967288, %v727_v59  ;;  %v729_v1 = vand.u32 7, %v727_v59 }
 0x55a   : > { %v735_v61 = vadd.f32 1e-08, %v731_v60  ;;  %vm741_vm3 = vcmp.eq.s32.totalorder %v1975_v6, %v729_v1  ;;  %v496_v6 = vmax.f32 %v490_v17, 0.0 }
 0x55c   : > { %1218 = vrcp.f32 %v735_v61 }
 0x562   : > { %v1217_v0 = vpop.eup %1216 }
 0x563   : > { %v738_v2 = vadd.f32 %v1217_v0, %v688_v63  ;;  %v742_v3 = vsel %vm740_vm1, %v1217_v0, 0.0 }
 0x564   : > { %v744_v9 = vadd.f32 %v742_v3, %v694_v29 }
 0x565   : > { %1220 = vrcp.f32 %v738_v2 }
 0x566   : > { %v1219_v5 = vpop.eup %1218 }
 0x567   : > { %v743_v7 = vsel %vm741_vm3, %v1219_v5, 0.0  ;;  %v739_v8 = vadd.f32 %v1219_v5, %v689_v4 }
 0x568   : > { %v745_v10 = vadd.f32 %v743_v7, %v695_v33 }
 0x569   : > { %1222 = vrcp.f32 %v739_v8 }
 0x56a   : > { %v746_v11 = vpack.c.bf16 %v745_v10, %v744_v9 }
 0x56c   : > { %1058 = vmatmul.mubr.msk.bf16.vlgmr.msra.gmra.mrb[4].mxu1 %vm597_vm2, %v746_v11 }
 0x56f   : > { %v1221_v19 = vpop.eup %1220 }
 0x573   : > { %v1223_v23 = vpop.eup %1222 }
 0x63f   : > { %v789_v20 = vpop.f32.mrb[4].mxu1 }
 0x640   : > { %v798_v21 = vmul.f32 %v1221_v19, %v789_v20  ;;  %v1059_v22 = vpop.f32.mrb[5].mxu1 }
 0x641   : > { %v792_v24 = vpop.f32.mrb[6].mxu1 }
 0x642   : > { %v800_v26 = vadd.f32 %v798_v21, %v496_v6  ;;  %v799_v27 = vmul.f32 %v1223_v23, %v792_v24  ;;  %v1060_v28 = vpop.f32.mrb[7].mxu1 }
 0x644   : > { %802 = vst.msk [vmem:[%s427_s24] sm:$0xff] %vm447_vm15, %v800_v26  ;;  %v801_v29 = vadd.f32 %v799_v27, %v497_v25 }
 0x646   : > { %803 = vst.msk [vmem:[%s427_s24 + $0x8] sm:$0xff] %vm447_vm15, %v801_v29 }
 0x647   : > { %1413 = shalt.err (!%p1410_p6)
}
 0x648   : > { %s1414_s18 = scalar_lea.hbm %s2035_s27, 256  ;;  %s1418_s16 = scalar_lea.hbm %s2195_s10, 1024 }
 0x649   : > { %p1415_p3 = scmp.ne.s32.totalorder %s2035_s27, %s1414_s18  ;;  %p1419_p11 = scmp.lt.u32.totalorder %s2035_s27, %s2195_s10 }
 0x64a   : > { %p1420_p7 = scmp.lt.u32.totalorder %s1418_s16, %s1414_s18  ;;  %p1422_p4 = scmp.lt.u32.totalorder %s1414_s18, %s2035_s27 }
 0x64b   : > { %p1416_p5 = pnand %p1415_p3, %p2196_p0 }
 0x64c   : > { %p1421_p1 = por %p1420_p7, %p1419_p11 }
 0x64d   : > { %p1417_p2 = pneg %p1416_p5 }
 0x64e   : > { %p1423_p9 = por %p1422_p4, %p1421_p1 }
 0x650   : > { %p1424_p8 = pnand %p1423_p9, %p1417_p2 }
 0x652   : > { %1427 = shalt.err (!%p1424_p8)
}
 0x653   : > { %s1557_s9 = smov 128   ;;  %s1558_s24 = smov 8  }
 0x654   : > { %1077 = dma.vmem_to_hbm [thread:$0]  (%p2196_p0), %s2037_s15, 256, %s2035_s27, %s805_s29, %s1557_s9, %s1557_s9, %s1558_s24  }
 0x655 PF: > { %s2197_s12 = sld [smem:[#allocation21_spill]]  ;;  %s2198_s1 = sld [smem:[#allocation29_spill]] }
 0x656   : > { %p1108_p13 = scmp.ge.s32.totalorder %s1542_s7, 2 }
 0x65b   : > { %s835_s19 = sand.u32 1, %s2197_s12   ;;  %p2199_p10 = scmp.ne.s32.totalorder %s2198_s1, 0 }
 0x65c   : > { %s836_s6 = scalar_lea.sflag [#allocation4], %s835_s19 }
 0x65d   : > { %p1100_p12 = pnand %p1108_p13, %p2199_p10 }
 0x65f   : > { %1497 = dma.done.wait (!%p1100_p12), %s836_s6, 256  }
 0x660   : > { %1499 = vsyncadd (!%p1100_p12), %s836_s6, 4294967040  ;;  %s29_s7 = sadd.s32 1, %s1542_s7   ;;  %s2200_s11 = sld [smem:[#allocation32_spill]] }
 0x661   : > { %p26_p6 = scmp.ge.s32.totalorder %s29_s7, 6   ;;  %s2201_s27 = sld [smem:[#allocation24_spill]] }
 0x662   : > { %s2202_s29 = sld [smem:[#allocation30_spill]]  ;;  %s2203_s15 = sld [smem:[#allocation31_spill]] }
 0x663   : > { %s2204_s21 = smov %s1506_s22  ;;  %s2205_s22 = smov %s1510_s23 }
 0x664   : > { %s2206_s23 = smov %s1871_s4  ;;  %s2207_s24 = smov %s1518_s25 }
 0x665   : > { %s2208_s25 = smov %s1522_s26  ;;  %s2210_s28 = smov %s1538_s30 }
 0x666   : > { %s2209_s26 = smov %s2200_s11  ;;  %28 = sbr.rel (!%p26_p6) target bundleno = 18 (0x12), region = 134 }
 0x668   : > { %s2211_s30 = smov %s2203_s15 }
 0x66d   :  { %841 = vsyncpa [#allocation3], 1 }
 0x66e   :  { %843 = vsyncpa [#allocation3 + $0x1], 1 }
 0x66f   :  { %844 = vsyncpa [#allocation6], 1 }
 0x670   :  { %846 = vsyncpa [#allocation6 + $0x1], 1 }
 0x671   :  { %847 = vsyncpa [#allocation9], 1 }
 0x672   :  { %849 = vsyncpa [#allocation9 + $0x1], 1 }
 0x673   :  { %850 = vsyncpa [#allocation12], 1 }
 0x674   :  { %851 = vsyncpa [#allocation4], 1 }
 0x675   :  { %853 = vsyncpa [#allocation4 + $0x1], 1 }

</bundles_post_ra>
